<compile_context>
chip_gen: v7x
topology: tpu7x:2x2x1
jax: 0.10.0
libtpu: 0.0.40
codegen_flags: <defaults>
</compile_context>

<pallas_src>
import jax
import jax.numpy as jnp
from jax import lax
from jax.experimental import pallas as pl
from jax.experimental.pallas import tpu as pltpu

LANES = 128
MAX_BLOCK_ROWS = 2048      # 2048 * 128 * 4B = 1 MiB per f32 input block
NUM_CORE_SPLITS = 2        # leading "parallel" grid axis (both TCs on v7x)


def _make_kernel(block_rows, nb_per_core, focal_alpha, focal_gamma):
    """Builds the streaming partial-sum kernel.

    Kernel args: (n_ref[SMEM scalar prefetch], x_ref, t_ref, out_ref, acc_ref)
    acc_ref (VMEM f32[4, 128]) rows: 0=sum(x*t), 1=sum(x), 2=sum(t), 3=sum(focal)
    """
    block_elems = block_rows * LANES

    def partials(x, t):
        # Per-lane partial sums for one block.  x, t are f32[block_rows, 128].
        xt = x * t
        prod_s = jnp.sum(xt, axis=0, keepdims=True)
        x_s = jnp.sum(x, axis=0, keepdims=True)
        t_s = jnp.sum(t, axis=0, keepdims=True)
        # Stable BCE-with-logits: max(x,0) - x*t + log(1 + exp(-|x|))
        bce = jnp.maximum(x, 0.0) - xt + jnp.log(1.0 + jnp.exp(-jnp.abs(x)))
        pt = jnp.exp(-bce)
        omp = 1.0 - pt
        if float(focal_gamma) == 2.0:
            w = omp * omp
        else:
            w = omp ** focal_gamma
        focal = focal_alpha * w * bce
        return prod_s, x_s, t_s, focal

    def accumulate(acc_ref, prod_s, x_s, t_s, focal_s):
        acc_ref[0:1, :] += prod_s
        acc_ref[1:2, :] += x_s
        acc_ref[2:3, :] += t_s
        acc_ref[3:4, :] += focal_s

    def kernel(n_ref, x_ref, t_ref, out_ref, acc_ref):
        c = pl.program_id(0)          # core-split index (parallel)
        i = pl.program_id(1)          # per-core block index (reduction)

        @pl.when(i == 0)
        def _init():
            acc_ref[...] = jnp.zeros_like(acc_ref)

        n = n_ref[0]
        blk = c * nb_per_core + i          # logical (unclamped) block id
        blk_start = blk * block_elems
        is_full = (blk_start + block_elems) <= n

        # ---- fast path: every element of this block is valid input data ----
        @pl.when(is_full)
        def _full_block():
            x = x_ref[...].astype(jnp.float32)
            t = t_ref[...].astype(jnp.float32)
            prod_s, x_s, t_s, focal = partials(x, t)
            accumulate(acc_ref, prod_s, x_s, t_s,
                       jnp.sum(focal, axis=0, keepdims=True))

        # ---- ragged path: tail block, lane padding, or clamped duplicate ----
        @pl.when(jnp.logical_not(is_full))
        def _ragged_block():
            row = lax.broadcasted_iota(jnp.int32, (block_rows, LANES), 0)
            lane = lax.broadcasted_iota(jnp.int32, (block_rows, LANES), 1)
            idx = blk_start + row * LANES + lane
            mask = idx < n
            x = jnp.where(mask, x_ref[...].astype(jnp.float32), 0.0)
            t = jnp.where(mask, t_ref[...].astype(jnp.float32), 0.0)
            prod_s, x_s, t_s, focal = partials(x, t)
            # masked elems have bce = log(2) != 0, so re-mask the focal term
            focal = jnp.where(mask, focal, 0.0)
            accumulate(acc_ref, prod_s, x_s, t_s,
                       jnp.sum(focal, axis=0, keepdims=True))

        @pl.when(i == pl.num_programs(1) - 1)
        def _finalize():
            out_ref[0] = acc_ref[...]

    return kernel


def combined_loss(inputs, targets, *, alpha=0.5, beta=0.5, smooth=1.0,
                  focal_alpha=1.0, focal_gamma=2.0):
    """Equivalent of CombinedLoss(alpha, beta).forward(inputs, targets)."""
    assert inputs.shape == targets.shape
    x = jnp.reshape(inputs, (-1,))          # keep native dtype; cast in-kernel
    t = jnp.reshape(targets, (-1,))
    n = x.shape[0]

    # Only pad up to the next multiple of 128 lanes (needed for the 2-D
    # reshape); padded values are masked out inside the kernel's ragged path.
    rows = pl.cdiv(n, LANES)
    n_lane = rows * LANES
    if n_lane != n:
        x = jnp.pad(x, (0, n_lane - n))
        t = jnp.pad(t, (0, n_lane - n))
    x2 = x.reshape(rows, LANES)
    t2 = t.reshape(rows, LANES)

    # Block size: big tiles to amortize per-step overhead, but (8,128)-legal.
    block_rows = rows if rows <= MAX_BLOCK_ROWS else MAX_BLOCK_ROWS
    nb_total = pl.cdiv(rows, block_rows)
    nb_per_core = pl.cdiv(nb_total, NUM_CORE_SPLITS)

    def in_map(c, i, n_ref):
        # Clamp so duplicated blocks (when nb_total is odd / tiny) stay in
        # range; their contribution is fully masked out in the kernel.
        return (jnp.minimum(c * nb_per_core + i, nb_total - 1), 0)

    kernel = _make_kernel(block_rows, nb_per_core,
                          float(focal_alpha), float(focal_gamma))

    partials = pl.pallas_call(
        kernel,
        out_shape=jax.ShapeDtypeStruct((NUM_CORE_SPLITS, 4, LANES), jnp.float32),
        grid_spec=pltpu.PrefetchScalarGridSpec(
            num_scalar_prefetch=1,
            grid=(NUM_CORE_SPLITS, nb_per_core),
            in_specs=[
                pl.BlockSpec((block_rows, LANES), in_map),
                pl.BlockSpec((block_rows, LANES), in_map),
            ],
            out_specs=pl.BlockSpec((1, 4, LANES), lambda c, i, n_ref: (c, 0, 0)),
            scratch_shapes=[pltpu.VMEM((4, LANES), jnp.float32)],
        ),
        compiler_params=pltpu.CompilerParams(
            dimension_semantics=("parallel", "arbitrary"),
        ),
    )(jnp.array([n], dtype=jnp.int32), x2, t2)

    # Tiny final combine in plain JAX (per-core + per-lane reduce of 4 KiB).
    sums = jnp.sum(partials, axis=(0, 2))   # [inter, sum_x, sum_t, focal_sum]
    inter, sum_x, sum_t, foc_sum = sums[0], sums[1], sums[2], sums[3]
    dice_loss = 1.0 - (2.0 * inter + smooth) / (sum_x + sum_t + smooth)
    focal_loss = foc_sum / jnp.float32(n)   # reduction='mean'
    return alpha * dice_loss + beta * focal_loss


if __name__ == "__main__":
    key = jax.random.PRNGKey(0)
    k1, k2 = jax.random.split(key)
    # NCHW logits (FocalLoss defaults to logits=True) and binary masks.
    inputs = jax.random.normal(k1, (2, 4, 16, 16), jnp.float32)
    targets = (jax.random.uniform(k2, (2, 4, 16, 16)) > 0.5).astype(jnp.float32)

    loss = jax.block_until_ready(combined_loss(inputs, targets))

    # Pure-JAX reference implementing the same PyTorch math.
    xf = inputs.reshape(-1).astype(jnp.float32)
    tf_ = targets.reshape(-1).astype(jnp.float32)
    inter = jnp.sum(xf * tf_)
    dice_ref = 1.0 - (2.0 * inter + 1.0) / (jnp.sum(xf) + jnp.sum(tf_) + 1.0)
    bce = jnp.maximum(xf, 0.0) - xf * tf_ + jnp.log(1.0 + jnp.exp(-jnp.abs(xf)))
    pt = jnp.exp(-bce)
    focal_ref = jnp.mean(1.0 * (1.0 - pt) ** 2 * bce)
    ref = 0.5 * dice_ref + 0.5 * focal_ref

    assert jnp.allclose(loss, ref, atol=1e-5, rtol=1e-5), (loss, ref)
    print("KERNEL_OK")
</pallas_src>

<mosaic_0001>
module attributes {stable_mosaic.version = 11 : i64} {
  func.func @kernel(%arg0: i32, %arg1: i32, %arg2: memref<1xi32, #tpu.memory_space<smem>>, %arg3: memref<16x128xf32, #tpu.memory_space<vmem>>, %arg4: memref<16x128xf32, #tpu.memory_space<vmem>>, %arg5: memref<1x4x128xf32, #tpu.memory_space<vmem>>, %arg6: memref<4x128xf32, #tpu.memory_space<vmem>>) attributes {dimension_semantics = [#tpu.dimension_semantics<parallel>, #tpu.dimension_semantics<arbitrary>], iteration_bounds = array<i64: 2, 1>, scalar_prefetch = 1 : i64, scratch_operands = 1 : i64, tpu.core_type = #tpu.core_type<tc>, window_params = [{transform_indices = @transform_0, window_bounds = array<i64: 16, 128>}, {transform_indices = @transform_1, window_bounds = array<i64: 16, 128>}, {transform_indices = @transform_2, window_bounds = array<i64: 1, 4, 128>}]} {
    %c0_i32 = arith.constant 0 : i32
    %0 = arith.cmpi eq, %arg1, %c0_i32 : i32
    %1 = arith.extui %0 : i1 to i32
    %c0_i32_0 = arith.constant 0 : i32
    %2 = arith.cmpi ne, %1, %c0_i32_0 : i32
    scf.if %2 {
      %cst = arith.constant 0.000000e+00 : f32
      %17 = vector.broadcast %cst : f32 to vector<4x128xf32>
      %c0_6 = arith.constant 0 : index
      %c0_7 = arith.constant 0 : index
      %18 = vector.load %arg6[%c0_6, %c0_7] : memref<4x128xf32, #tpu.memory_space<vmem>>, vector<4x128xf32>
      tpu.vector_store %arg6[%c0_6, %c0_7], %17 {strides = array<i32>} : memref<4x128xf32, #tpu.memory_space<vmem>>, vector<4x128xf32>,
    } else {
    }
    %c0 = arith.constant 0 : index
    %3 = memref.load %arg2[%c0] : memref<1xi32, #tpu.memory_space<smem>>
    %c1_i32 = arith.constant 1 : i32
    %4 = arith.muli %arg0, %c1_i32 : i32
    %5 = arith.addi %4, %arg1 : i32
    %c2048_i32 = arith.constant 2048 : i32
    %6 = arith.muli %5, %c2048_i32 : i32
    %c2048_i32_1 = arith.constant 2048 : i32
    %7 = arith.addi %6, %c2048_i32_1 : i32
    %8 = arith.cmpi sle, %7, %3 : i32
    %9 = arith.extui %8 : i1 to i32
    %c0_i32_2 = arith.constant 0 : i32
    %10 = arith.cmpi ne, %9, %c0_i32_2 : i32
    scf.if %10 {
      %c0_6 = arith.constant 0 : index
      %c0_7 = arith.constant 0 : index
      %17 = vector.load %arg3[%c0_6, %c0_7] : memref<16x128xf32, #tpu.memory_space<vmem>>, vector<16x128xf32>
      %c0_8 = arith.constant 0 : index
      %c0_9 = arith.constant 0 : index
      %18 = vector.load %arg4[%c0_8, %c0_9] : memref<16x128xf32, #tpu.memory_space<vmem>>, vector<16x128xf32>
      %19 = arith.mulf %17, %18 : vector<16x128xf32>
      %cst = arith.constant dense<0.000000e+00> : vector<128xf32>
      %20 = vector.multi_reduction <add>, %19, %cst [0] : vector<16x128xf32> to vector<128xf32>
      %21 = vector.shape_cast %20 : vector<128xf32> to vector<1x128xf32>
      %cst_10 = arith.constant dense<0.000000e+00> : vector<128xf32>
      %22 = vector.multi_reduction <add>, %17, %cst_10 [0] : vector<16x128xf32> to vector<128xf32>
      %23 = vector.shape_cast %22 : vector<128xf32> to vector<1x128xf32>
      %cst_11 = arith.constant dense<0.000000e+00> : vector<128xf32>
      %24 = vector.multi_reduction <add>, %18, %cst_11 [0] : vector<16x128xf32> to vector<128xf32>
      %25 = vector.shape_cast %24 : vector<128xf32> to vector<1x128xf32>
      %cst_12 = arith.constant 0.000000e+00 : f32
      %26 = vector.broadcast %cst_12 : f32 to vector<16x128xf32>
      %27 = arith.maximumf %17, %26 : vector<16x128xf32>
      %28 = arith.subf %27, %19 : vector<16x128xf32>
      %29 = math.absf %17 : vector<16x128xf32>
      %cst_13 = arith.constant 0.000000e+00 : f32
      %30 = vector.broadcast %cst_13 : f32 to vector<16x128xf32>
      %31 = arith.subf %30, %29 : vector<16x128xf32>
      %32 = math.exp %31 : vector<16x128xf32>
      %cst_14 = arith.constant 1.000000e+00 : f32
      %33 = vector.broadcast %cst_14 : f32 to vector<16x128xf32>
      %34 = arith.addf %33, %32 : vector<16x128xf32>
      %35 = math.log %34 : vector<16x128xf32>
      %36 = arith.addf %28, %35 : vector<16x128xf32>
      %cst_15 = arith.constant 0.000000e+00 : f32
      %37 = vector.broadcast %cst_15 : f32 to vector<16x128xf32>
      %38 = arith.subf %37, %36 : vector<16x128xf32>
      %39 = math.exp %38 : vector<16x128xf32>
      %cst_16 = arith.constant 1.000000e+00 : f32
      %40 = vector.broadcast %cst_16 : f32 to vector<16x128xf32>
      %41 = arith.subf %40, %39 : vector<16x128xf32>
      %42 = arith.mulf %41, %41 : vector<16x128xf32>
      %cst_17 = arith.constant 1.000000e+00 : f32
      %43 = vector.broadcast %cst_17 : f32 to vector<16x128xf32>
      %44 = arith.mulf %43, %42 : vector<16x128xf32>
      %45 = arith.mulf %44, %36 : vector<16x128xf32>
      %cst_18 = arith.constant dense<0.000000e+00> : vector<128xf32>
      %46 = vector.multi_reduction <add>, %45, %cst_18 [0] : vector<16x128xf32> to vector<128xf32>
      %47 = vector.shape_cast %46 : vector<128xf32> to vector<1x128xf32>
      %c0_19 = arith.constant 0 : index
      %c0_20 = arith.constant 0 : index
      %48 = vector.load %arg6[%c0_19, %c0_20] : memref<4x128xf32, #tpu.memory_space<vmem>>, vector<1x128xf32>
      %49 = arith.addf %48, %21 : vector<1x128xf32>
      %c0_21 = arith.constant 0 : index
      %c0_22 = arith.constant 0 : index
      %50 = vector.load %arg6[%c0_21, %c0_22] : memref<4x128xf32, #tpu.memory_space<vmem>>, vector<1x128xf32>
      tpu.vector_store %arg6[%c0_21, %c0_22], %49 {strides = array<i32>} : memref<4x128xf32, #tpu.memory_space<vmem>>, vector<1x128xf32>,
      %c1 = arith.constant 1 : index
      %c0_23 = arith.constant 0 : index
      %51 = vector.load %arg6[%c1, %c0_23] : memref<4x128xf32, #tpu.memory_space<vmem>>, vector<1x128xf32>
      %52 = arith.addf %51, %23 : vector<1x128xf32>
      %c1_24 = arith.constant 1 : index
      %c0_25 = arith.constant 0 : index
      %53 = vector.load %arg6[%c1_24, %c0_25] : memref<4x128xf32, #tpu.memory_space<vmem>>, vector<1x128xf32>
      tpu.vector_store %arg6[%c1_24, %c0_25], %52 {strides = array<i32>} : memref<4x128xf32, #tpu.memory_space<vmem>>, vector<1x128xf32>,
      %c2 = arith.constant 2 : index
      %c0_26 = arith.constant 0 : index
      %54 = vector.load %arg6[%c2, %c0_26] : memref<4x128xf32, #tpu.memory_space<vmem>>, vector<1x128xf32>
      %55 = arith.addf %54, %25 : vector<1x128xf32>
      %c2_27 = arith.constant 2 : index
      %c0_28 = arith.constant 0 : index
      %56 = vector.load %arg6[%c2_27, %c0_28] : memref<4x128xf32, #tpu.memory_space<vmem>>, vector<1x128xf32>
      tpu.vector_store %arg6[%c2_27, %c0_28], %55 {strides = array<i32>} : memref<4x128xf32, #tpu.memory_space<vmem>>, vector<1x128xf32>,
      %c3 = arith.constant 3 : index
      %c0_29 = arith.constant 0 : index
      %57 = vector.load %arg6[%c3, %c0_29] : memref<4x128xf32, #tpu.memory_space<vmem>>, vector<1x128xf32>
      %58 = arith.addf %57, %47 : vector<1x128xf32>
      %c3_30 = arith.constant 3 : index
      %c0_31 = arith.constant 0 : index
      %59 = vector.load %arg6[%c3_30, %c0_31] : memref<4x128xf32, #tpu.memory_space<vmem>>, vector<1x128xf32>
      tpu.vector_store %arg6[%c3_30, %c0_31], %58 {strides = array<i32>} : memref<4x128xf32, #tpu.memory_space<vmem>>, vector<1x128xf32>,
    } else {
    }
    %true = arith.constant true
    %11 = arith.xori %8, %true : i1
    %12 = arith.extui %11 : i1 to i32
    %c0_i32_3 = arith.constant 0 : i32
    %13 = arith.cmpi ne, %12, %c0_i32_3 : i32
    scf.if %13 {
      %17 = tpu.iota {dimensions = array<i32: 0>} : vector<16x128xi32>
      %18 = tpu.iota {dimensions = array<i32: 1>} : vector<16x128xi32>
      %c128_i32 = arith.constant 128 : i32
      %19 = vector.broadcast %c128_i32 : i32 to vector<16x128xi32>
      %20 = arith.muli %17, %19 : vector<16x128xi32>
      %21 = vector.broadcast %6 : i32 to vector<16x128xi32>
      %22 = arith.addi %21, %20 : vector<16x128xi32>
      %23 = arith.addi %22, %18 : vector<16x128xi32>
      %24 = vector.broadcast %3 : i32 to vector<16x128xi32>
      %25 = arith.cmpi slt, %23, %24 : vector<16x128xi32>
      %c0_6 = arith.constant 0 : index
      %c0_7 = arith.constant 0 : index
      %26 = vector.load %arg3[%c0_6, %c0_7] : memref<16x128xf32, #tpu.memory_space<vmem>>, vector<16x128xf32>
      %cst = arith.constant 0.000000e+00 : f32
      %27 = vector.broadcast %cst : f32 to vector<16x128xf32>
      %28 = arith.select %25, %26, %27 : vector<16x128xi1>, vector<16x128xf32>
      %c0_8 = arith.constant 0 : index
      %c0_9 = arith.constant 0 : index
      %29 = vector.load %arg4[%c0_8, %c0_9] : memref<16x128xf32, #tpu.memory_space<vmem>>, vector<16x128xf32>
      %cst_10 = arith.constant 0.000000e+00 : f32
      %30 = vector.broadcast %cst_10 : f32 to vector<16x128xf32>
      %31 = arith.select %25, %29, %30 : vector<16x128xi1>, vector<16x128xf32>
      %32 = arith.mulf %28, %31 : vector<16x128xf32>
      %cst_11 = arith.constant dense<0.000000e+00> : vector<128xf32>
      %33 = vector.multi_reduction <add>, %32, %cst_11 [0] : vector<16x128xf32> to vector<128xf32>
      %34 = vector.shape_cast %33 : vector<128xf32> to vector<1x128xf32>
      %cst_12 = arith.constant dense<0.000000e+00> : vector<128xf32>
      %35 = vector.multi_reduction <add>, %28, %cst_12 [0] : vector<16x128xf32> to vector<128xf32>
      %36 = vector.shape_cast %35 : vector<128xf32> to vector<1x128xf32>
      %cst_13 = arith.constant dense<0.000000e+00> : vector<128xf32>
      %37 = vector.multi_reduction <add>, %31, %cst_13 [0] : vector<16x128xf32> to vector<128xf32>
      %38 = vector.shape_cast %37 : vector<128xf32> to vector<1x128xf32>
      %cst_14 = arith.constant 0.000000e+00 : f32
      %39 = vector.broadcast %cst_14 : f32 to vector<16x128xf32>
      %40 = arith.maximumf %28, %39 : vector<16x128xf32>
      %41 = arith.subf %40, %32 : vector<16x128xf32>
      %42 = math.absf %28 : vector<16x128xf32>
      %cst_15 = arith.constant 0.000000e+00 : f32
      %43 = vector.broadcast %cst_15 : f32 to vector<16x128xf32>
      %44 = arith.subf %43, %42 : vector<16x128xf32>
      %45 = math.exp %44 : vector<16x128xf32>
      %cst_16 = arith.constant 1.000000e+00 : f32
      %46 = vector.broadcast %cst_16 : f32 to vector<16x128xf32>
      %47 = arith.addf %46, %45 : vector<16x128xf32>
      %48 = math.log %47 : vector<16x128xf32>
      %49 = arith.addf %41, %48 : vector<16x128xf32>
      %cst_17 = arith.constant 0.000000e+00 : f32
      %50 = vector.broadcast %cst_17 : f32 to vector<16x128xf32>
      %51 = arith.subf %50, %49 : vector<16x128xf32>
      %52 = math.exp %51 : vector<16x128xf32>
      %cst_18 = arith.constant 1.000000e+00 : f32
      %53 = vector.broadcast %cst_18 : f32 to vector<16x128xf32>
      %54 = arith.subf %53, %52 : vector<16x128xf32>
      %55 = arith.mulf %54, %54 : vector<16x128xf32>
      %cst_19 = arith.constant 1.000000e+00 : f32
      %56 = vector.broadcast %cst_19 : f32 to vector<16x128xf32>
      %57 = arith.mulf %56, %55 : vector<16x128xf32>
      %58 = arith.mulf %57, %49 : vector<16x128xf32>
      %cst_20 = arith.constant 0.000000e+00 : f32
      %59 = vector.broadcast %cst_20 : f32 to vector<16x128xf32>
      %60 = arith.select %25, %58, %59 : vector<16x128xi1>, vector<16x128xf32>
      %cst_21 = arith.constant dense<0.000000e+00> : vector<128xf32>
      %61 = vector.multi_reduction <add>, %60, %cst_21 [0] : vector<16x128xf32> to vector<128xf32>
      %62 = vector.shape_cast %61 : vector<128xf32> to vector<1x128xf32>
      %c0_22 = arith.constant 0 : index
      %c0_23 = arith.constant 0 : index
      %63 = vector.load %arg6[%c0_22, %c0_23] : memref<4x128xf32, #tpu.memory_space<vmem>>, vector<1x128xf32>
      %64 = arith.addf %63, %34 : vector<1x128xf32>
      %c0_24 = arith.constant 0 : index
      %c0_25 = arith.constant 0 : index
      %65 = vector.load %arg6[%c0_24, %c0_25] : memref<4x128xf32, #tpu.memory_space<vmem>>, vector<1x128xf32>
      tpu.vector_store %arg6[%c0_24, %c0_25], %64 {strides = array<i32>} : memref<4x128xf32, #tpu.memory_space<vmem>>, vector<1x128xf32>,
      %c1 = arith.constant 1 : index
      %c0_26 = arith.constant 0 : index
      %66 = vector.load %arg6[%c1, %c0_26] : memref<4x128xf32, #tpu.memory_space<vmem>>, vector<1x128xf32>
      %67 = arith.addf %66, %36 : vector<1x128xf32>
      %c1_27 = arith.constant 1 : index
      %c0_28 = arith.constant 0 : index
      %68 = vector.load %arg6[%c1_27, %c0_28] : memref<4x128xf32, #tpu.memory_space<vmem>>, vector<1x128xf32>
      tpu.vector_store %arg6[%c1_27, %c0_28], %67 {strides = array<i32>} : memref<4x128xf32, #tpu.memory_space<vmem>>, vector<1x128xf32>,
      %c2 = arith.constant 2 : index
      %c0_29 = arith.constant 0 : index
      %69 = vector.load %arg6[%c2, %c0_29] : memref<4x128xf32, #tpu.memory_space<vmem>>, vector<1x128xf32>
      %70 = arith.addf %69, %38 : vector<1x128xf32>
      %c2_30 = arith.constant 2 : index
      %c0_31 = arith.constant 0 : index
      %71 = vector.load %arg6[%c2_30, %c0_31] : memref<4x128xf32, #tpu.memory_space<vmem>>, vector<1x128xf32>
      tpu.vector_store %arg6[%c2_30, %c0_31], %70 {strides = array<i32>} : memref<4x128xf32, #tpu.memory_space<vmem>>, vector<1x128xf32>,
      %c3 = arith.constant 3 : index
      %c0_32 = arith.constant 0 : index
      %72 = vector.load %arg6[%c3, %c0_32] : memref<4x128xf32, #tpu.memory_space<vmem>>, vector<1x128xf32>
      %73 = arith.addf %72, %62 : vector<1x128xf32>
      %c3_33 = arith.constant 3 : index
      %c0_34 = arith.constant 0 : index
      %74 = vector.load %arg6[%c3_33, %c0_34] : memref<4x128xf32, #tpu.memory_space<vmem>>, vector<1x128xf32>
      tpu.vector_store %arg6[%c3_33, %c0_34], %73 {strides = array<i32>} : memref<4x128xf32, #tpu.memory_space<vmem>>, vector<1x128xf32>,
    } else {
    }
    %c0_i32_4 = arith.constant 0 : i32
    %14 = arith.cmpi eq, %arg1, %c0_i32_4 : i32
    %15 = arith.extui %14 : i1 to i32
    %c0_i32_5 = arith.constant 0 : i32
    %16 = arith.cmpi ne, %15, %c0_i32_5 : i32
    scf.if %16 {
      %c0_6 = arith.constant 0 : index
      %c0_7 = arith.constant 0 : index
      %17 = vector.load %arg6[%c0_6, %c0_7] : memref<4x128xf32, #tpu.memory_space<vmem>>, vector<4x128xf32>
      %c0_8 = arith.constant 0 : index
      %c0_9 = arith.constant 0 : index
      %c0_10 = arith.constant 0 : index
      %18 = vector.load %arg5[%c0_8, %c0_9, %c0_10] : memref<1x4x128xf32, #tpu.memory_space<vmem>>, vector<1x4x128xf32>
      %19 = vector.shape_cast %18 : vector<1x4x128xf32> to vector<4x128xf32>
      %20 = vector.shape_cast %17 : vector<4x128xf32> to vector<1x4x128xf32>
      tpu.vector_store %arg5[%c0_8, %c0_9, %c0_10], %20 {strides = array<i32>} : memref<1x4x128xf32, #tpu.memory_space<vmem>>, vector<1x4x128xf32>,
    } else {
    }
    return
  }
  func.func @transform_0(%arg0: i32, %arg1: i32, %arg2: memref<1xi32, #tpu.memory_space<smem>>) -> (i32, i32) {
    %c1_i32 = arith.constant 1 : i32
    %0 = arith.muli %arg0, %c1_i32 : i32
    %1 = arith.addi %0, %arg1 : i32
    %c0_i32 = arith.constant 0 : i32
    %2 = arith.minsi %1, %c0_i32 : i32
    %c0_i32_0 = arith.constant 0 : i32
    %c0_i32_1 = arith.constant 0 : i32
    return %2, %c0_i32_0 : i32, i32
  }
  func.func @transform_1(%arg0: i32, %arg1: i32, %arg2: memref<1xi32, #tpu.memory_space<smem>>) -> (i32, i32) {
    %c1_i32 = arith.constant 1 : i32
    %0 = arith.muli %arg0, %c1_i32 : i32
    %1 = arith.addi %0, %arg1 : i32
    %c0_i32 = arith.constant 0 : i32
    %2 = arith.minsi %1, %c0_i32 : i32
    %c0_i32_0 = arith.constant 0 : i32
    %c0_i32_1 = arith.constant 0 : i32
    return %2, %c0_i32_0 : i32, i32
  }
  func.func @transform_2(%arg0: i32, %arg1: i32, %arg2: memref<1xi32, #tpu.memory_space<smem>>) -> (i32, i32, i32) {
    %c0_i32 = arith.constant 0 : i32
    %c0_i32_0 = arith.constant 0 : i32
    %c0_i32_1 = arith.constant 0 : i32
    return %arg0, %c0_i32, %c0_i32_0 : i32, i32, i32
  }
}

</mosaic_0001>

<bundles_post_ra>
// kernel: tpu_custom_call.1
= control target key start
LH: loop header
LB: loop body
LE: loop exit
PB: predicated region body
PF: predicated region fallthrough
CT: control target
= control target key end

     0   :  { %s1149_s0 = inlined_call_operand.<no memory space> [shape: s32[1], index: 0, kind: input, shape index: {}]   ;;  %s1150_s1 = inlined_call_operand.hbm [shape: f32[16,128], index: 1, kind: input, shape index: {}]   ;;  %s1151_s2 = inlined_call_operand.hbm [shape: f32[16,128], index: 2, kind: input, shape index: {}]   ;;  %s1152_s3 = inlined_call_operand.hbm [shape: f32[2,4,128], index: 3, kind: output, shape index: {}]  }
   0x1   :  { %8 = sst [smem:[#allocation4]] %s1149_s0 }
   0x2   :  { %9 = vsyncpa [#allocation6], 0 }
   0x3   :  { %11 = vsyncpa [#allocation6 + $0x1], 0 }
   0x4   :  { %12 = vsyncpa [#allocation9], 0 }
   0x5   :  { %14 = vsyncpa [#allocation9 + $0x1], 0 }
   0x6   :  { %15 = vsyncpa [#allocation7], 0 }
   0x7   :  { %17 = vsyncpa [#allocation7 + $0x1], 0  ;;  %s895_s14 = smov 0   ;;  %s897_s15 = smov 0  }
   0x8   :  { %s899_s16 = smov 0   ;;  %s901_s17 = smov 0  }
   0x9   :  { %s903_s18 = smov 0   ;;  %s905_s19 = smov 0  }
   0xa   :  { %s907_s20 = smov 0   ;;  %s909_s0 = smov 0  }
   0xb LB: > { %s556_s21 = sadd.s32 4294967295, %s864_s0   ;;  %s557_s22 = sadd.s32 4294967294, %s864_s0   ;;  %s864_s0 = sphi %s909_s0, %s23_s0   ;;  %s860_s20 = sphi %s907_s20, %s1175_s20   ;;  %s856_s19 = sphi %s905_s19, %s1174_s19   ;;  %s852_s18 = sphi %s903_s18, %s1139_s18   ;;  %s848_s17 = sphi %s901_s17, %s1173_s17   ;;  %s844_s16 = sphi %s899_s16, %s1172_s16   ;;  %s840_s15 = sphi %s897_s15, %s1171_s15   ;;  %s836_s14 = sphi %s895_s14, %s1170_s14  }
   0xc   : > { %s35_s23 = sadd.s32 1, %s860_s20  ;;  %p833_p1 = scmp.ne.s32.totalorder %s852_s18, 0 }
   0xd   : > { %p37_p0 = scmp.ge.s32.totalorder %s35_s23, 2  ;;  %p56_p2 = scmp.eq.s32.totalorder %s864_s0, 0 }
   0xe   : > { %p61_p3 = scmp.ne.s32.totalorder %s852_s18, %s848_s17  ;;  %p62_p5 = scmp.eq.s32.totalorder %s556_s21, 0 }
   0xf   : > { %s1177_s23 = smov (%p37_p0, %s35_s23), 0  ;;  %p941_p4 = por %p833_p1, %p56_p2 }
  0x10   : > { %p945_p6 = por %p62_p5, %p61_p3  ;;  %s103_s26 = ssub.s32 %s860_s20, %s1177_s23 }
  0x11   : > { %p104_p7 = scmp.eq.s32.totalorder %s103_s26, 0  ;;  %s106_s27 = sadd.s32 1, %s844_s16 }
  0x12   : > { %s1156_s25 = scalar_select %p945_p6, 1, 0 }
  0x13   : > { %s953_s28 = scalar_select %p104_p7, %s844_s16, %s106_s27  }
  0x14   : > { %p116_p8 = scmp.ne.s32.totalorder %s844_s16, %s840_s15  ;;  %p117_p9 = scmp.eq.s32.totalorder %s556_s21, 1 }
  0x15   : > { %p122_p10 = scmp.ne.s32.totalorder %s840_s15, %s836_s14  ;;  %p123_p11 = scmp.eq.s32.totalorder %s557_s22, 1 }
  0x16   : > { %p959_p12 = por %p117_p9, %p116_p8  ;;  %p596_p1 = scmp.lt.s32.totalorder %s864_s0, 2 }
  0x17   : > { %p964_p0 = por %p123_p11, %p122_p10  ;;  %s866_s4 = smov [#allocation5]  }
  0x18   : > { %s1157_s29 = scalar_select %p959_p12, 1, 0 }
  0x19   : > { %s1158_s30 = scalar_select %p964_p0, 1, 0 }
  0x1a   : > { %s157_s5 = sshll.u32 %s866_s4, 4  ;;  %p971_p2 = pnand %p596_p1, %p941_p4  ;;  %s158_s5 = int_to_ptr.vmem [resolvable:$true] %s157_s5 }
  0x1b   : > { %s697_s9 = scalar_lea.hbm %s1150_s1, 256 }
  0x1c   : > { %p698_p3 = scmp.ne.s32.totalorder %s1150_s1, %s697_s9  ;;  %p699_p5 = pneg %p971_p2 }
  0x1d   : > { %p704_p8 = scmp.lt.u32.totalorder %s697_s9, %s697_s9  ;;  %p706_p9 = scmp.lt.u32.totalorder %s697_s9, %s1150_s1 }
  0x1e   : > { %p700_p7 = pnand %p699_p5, %p698_p3 }
  0x1f   : > { %p707_p10 = por %p706_p9, %p704_p8 }
  0x20   : > { %p701_p4 = pneg %p700_p7 }
  0x22   : > { %p708_p11 = pnand %p707_p10, %p701_p4 }
  0x24   : > { %711 = shalt.err (!%p708_p11)
}
  0x25   : > { %s712_s17 = scalar_lea.vmem %s158_s5, 256  ;;  %s719_s21 = scalar_lea.vmem %s158_s5, 512 }
  0x26   : > { %p713_p1 = scmp.ne.s32.totalorder %s158_s5, %s712_s17  ;;  %p720_p12 = scmp.lt.s32.totalorder %s158_s5, %s158_s5 }
  0x27   : > { %p721_p6 = scmp.lt.s32.totalorder %s719_s21, %s712_s17 }
  0x28   : > { %p715_p13 = pnand %p713_p1, %p699_p5 }
  0x29   : > { %p722_p3 = por %p721_p6, %p720_p12 }
  0x2a   : > { %p716_p0 = pneg %p715_p13 }
  0x2c   : > { %p723_p7 = pnand %p722_p3, %p716_p0 }
  0x2e   : > { %726 = shalt.err (!%p723_p7)
}
  0x2f   : > { %s867_s22 = smov 128   ;;  %s868_s24 = smov 8  }
  0x30   : > { %588 = dma.hbm_to_vmem [thread:$0]  (!%p971_p2), %s1150_s1, 256, %s158_s5, [#allocation6], %s867_s22, %s867_s22, %s868_s24  }
  0x31   : > { %p566_p13 = scmp.ge.s32.totalorder %s864_s0, 1  ;;  %p189_p4 = scmp.lt.s32.totalorder %s864_s0, 3 }
  0x32   : > { %s869_s7 = smov [#allocation8]   ;;  %s727_s11 = scalar_lea.hbm %s1151_s2, 256 }
  0x33   : > { %p1002_p8 = pnand %p566_p13, %p189_p4  ;;  %s181_s8 = sshll.u32 %s869_s7, 4  ;;  %s182_s8 = int_to_ptr.vmem [resolvable:$true] %s181_s8 }
  0x34   : > { %p728_p6 = scmp.ne.s32.totalorder %s1151_s2, %s727_s11  ;;  %p734_p9 = scmp.lt.u32.totalorder %s727_s11, %s727_s11 }
  0x35   : > { %s1160_s4 = scalar_select %p1002_p8, 1, 0 }
  0x36   : > { %p730_p12 = pnand %p728_p6, %p699_p5  ;;  %p736_p10 = scmp.lt.u32.totalorder %s727_s11, %s1151_s2 }
  0x38   : > { %p731_p0 = pneg %p730_p12  ;;  %p737_p11 = por %p736_p10, %p734_p9 }
  0x3a   : > { %p738_p1 = pnand %p737_p11, %p731_p0 }
  0x3c   : > { %741 = shalt.err (!%p738_p1)
}
  0x3d   : > { %s742_s21 = scalar_lea.vmem %s182_s8, 256  ;;  %s749_s26 = scalar_lea.vmem %s182_s8, 512 }
  0x3e   : > { %p743_p3 = scmp.ne.s32.totalorder %s182_s8, %s742_s21  ;;  %p750_p4 = scmp.lt.s32.totalorder %s182_s8, %s182_s8 }
  0x3f   : > { %p751_p8 = scmp.lt.s32.totalorder %s749_s26, %s742_s21 }
  0x40   : > { %p745_p7 = pnand %p743_p3, %p699_p5 }
  0x41   : > { %p752_p6 = por %p751_p8, %p750_p4 }
  0x42   : > { %p746_p13 = pneg %p745_p7 }
  0x44   : > { %p753_p12 = pnand %p752_p6, %p746_p13 }
  0x46   : > { %756 = shalt.err (!%p753_p12)
}
  0x47   : > { %591 = dma.hbm_to_vmem [thread:$0]  (!%p971_p2), %s1151_s2, 256, %s182_s8, [#allocation9], %s867_s22, %s867_s22, %s868_s24  }
  0x48   : > { %p1161_p0 = scmp.ne.s32.totalorder %s1160_s4, 0 }
  0x49   : > { %s195_s9 = sand.u32 (!%p1161_p0), 1, %s852_s18   ;;  %p1162_p5 = scmp.ne.s32.totalorder (!%p1161_p0), %s1156_s25, 0 }
  0x4a   : > { %193 = sbr.rel (%p1161_p0) target bundleno = 279 (0x117), region = 28  ;;  %s567_s10 = sshll.u32 (!%p1161_p0), %s195_s9, 4 }
  0x4b   : > { %s196_s11 = scalar_lea.sflag (!%p1161_p0), [#allocation6], %s195_s9  ;;  %s1032_s12 = scalar_lea.vmem (!%p1161_p0), [#allocation5], %s567_s10 }
  0x51   : > { %822 = dma.done.wait (%p1162_p5), %s196_s11, 256  }
  0x52   : > { %824 = vsyncadd (%p1162_p5), %s196_s11, 4294967040  ;;  %s205_s6 = scalar_lea.sflag [#allocation9], %s195_s9  ;;  %s1038_s13 = scalar_lea.vmem [#allocation8], %s567_s10 }
  0x53   : > { %826 = dma.done.wait (%p1162_p5), %s205_s6, 256  }
  0x54   : > { %828 = vsyncadd (%p1162_p5), %s205_s6, 4294967040  ;;  %s231_s22 = sand.u32 1, %s840_s15   ;;  %s570_s24 = sshll.u32 %s856_s19, 11  ;;  %v870_v0 = vmov 0.0  }
  0x55   : > { %s1046_s4 = sld [smem:[#allocation4]]  ;;  %s1050_s8 = sshll.u32 %s231_s22, 2  ;;  %246 = vst [vmem:[#allocation2] sm:$0xf] %v870_v0 }
  0x56   : > { %s1054_s5 = sadd.s32 2048, %s570_s24  ;;  %s233_s17 = scalar_lea.vmem [#allocation10], %s1050_s8 }
  0x5b   : > { %p571_p2 = scmp.gt.s32.totalorder %s1054_s5, %s1046_s4 }
  0x5c   : > { %v255_v1 = vld [vmem:[%s1032_s12] sm:$0xff] (!%p571_p2)  ;;  %v256_v2 = vld [vmem:[%s1032_s12 + $0x8] sm:$0xff] (!%p571_p2) }
  0x5d   : > { %254 = sbr.rel (%p571_p2) target bundleno = 166 (0xa6), region = 44  ;;  %v257_v3 = vld [vmem:[%s1038_s13] sm:$0xff] (!%p571_p2)  ;;  %v258_v4 = vld [vmem:[%s1038_s13 + $0x8] sm:$0xff] (!%p571_p2)  ;;  %v286_v6 = vand.u32 (!%p571_p2), 2147483647, %v255_v1  ;;  %v268_v9 = vadd.f32 (!%p571_p2), %v256_v2, %v255_v1  ;;  %v282_v44 = vmax.f32 (!%p571_p2), %v255_v1, 0.0 }
  0x5e   : > { %v259_v5 = vmul.f32 (!%p571_p2), %v257_v3, %v255_v1  ;;  %v260_v7 = vmul.f32 (!%p571_p2), %v258_v4, %v256_v2  ;;  %v287_v8 = vand.u32 (!%p571_p2), 2147483647, %v256_v2  ;;  %v275_v10 = vadd.f32 (!%p571_p2), %v258_v4, %v257_v3  ;;  %v324_v29 = vld [vmem:[#allocation2 + $0x1] sm:$0x1] (!%p571_p2)  ;;  %v327_v33 = vld [vmem:[#allocation2 + $0x2] sm:$0x1] (!%p571_p2) }
  0x5f   : > { %v288_v11 = vsub.f32 (!%p571_p2), 0.0, %v286_v6  ;;  %v269_v14 = vrot.slane (!%p571_p2), %v268_v9, 4  ;;  %v321_v34 = vld [vmem:[#allocation2] sm:$0x1] (!%p571_p2)  ;;  %v283_v45 = vmax.f32 (!%p571_p2), %v256_v2, 0.0 }
  0x60   : > { %v261_v12 = vadd.f32 (!%p571_p2), %v260_v7, %v259_v5  ;;  %v289_v13 = vsub.f32 (!%p571_p2), 0.0, %v287_v8  ;;  %v276_v16 = vrot.slane (!%p571_p2), %v275_v10, 4  ;;  %v284_v46 = vsub.f32 (!%p571_p2), %v282_v44, %v259_v5  ;;  %v330_v8 = vld [vmem:[#allocation2 + $0x3] sm:$0x1] (!%p571_p2) }
  0x61   : > { %v290_v15 = vmul.f32 (!%p571_p2), 1.442695, %v288_v11  ;;  %v270_v19 = vadd.f32 (!%p571_p2), %v269_v14, %v268_v9  ;;  %v285_v48 = vsub.f32 (!%p571_p2), %v283_v45, %v260_v7 }
  0x62   : > { %v262_v17 = vrot.slane (!%p571_p2), %v261_v12, 4  ;;  %v292_v18 = vmul.f32 (!%p571_p2), 1.442695, %v289_v13  ;;  %v277_v20 = vadd.f32 (!%p571_p2), %v276_v16, %v275_v10 }
  0x63   : > { %673 = vpow2.f32 (!%p571_p2), %v290_v15  ;;  %v271_v22 = vrot.slane (!%p571_p2), %v270_v19, 2 }
  0x64   : > { %v263_v21 = vadd.f32 %v262_v17, %v261_v12  ;;  %675 = vpow2.f32 %v292_v18  ;;  %v278_v23 = vrot.slane %v277_v20, 2 }
  0x65   : > { %v272_v25 = vadd.f32 %v271_v22, %v270_v19 }
  0x66   : > { %v264_v24 = vrot.slane %v263_v21, 2  ;;  %v279_v26 = vadd.f32 %v278_v23, %v277_v20 }
  0x67   : > { %v273_v28 = vrot.slane %v272_v25, 1 }
  0x68   : > { %v265_v27 = vadd.f32 %v264_v24, %v263_v21  ;;  %v280_v30 = vrot.slane %v279_v26, 1 }
  0x69   : > { %v274_v32 = vadd.f32 %v273_v28, %v272_v25 }
  0x6a   : > { %v266_v31 = vrot.slane %v265_v27, 1  ;;  %v281_v35 = vadd.f32 %v280_v30, %v279_v26 }
  0x6b   : > { %v325_v37 = vadd.f32 %v324_v29, %v274_v32 }
  0x6c   : > { %v267_v36 = vadd.f32 %v266_v31, %v265_v27  ;;  %v328_v39 = vadd.f32 %v327_v33, %v281_v35 }
  0x6d   : > { %v674_v38 = vpop.eup %673  ;;  %326 = vst [vmem:[#allocation2 + $0x1] sm:$0x1] %v325_v37 }
  0x6e   : > { %v676_v40 = vpop.eup %675  ;;  %v322_v41 = vadd.f32 %v321_v34, %v267_v36  ;;  %v294_v42 = vadd.f32 1.0, %v674_v38  ;;  %329 = vst [vmem:[#allocation2 + $0x2] sm:$0x1] %v328_v39 }
  0x6f   : > { %v295_v43 = vadd.f32 1.0, %v676_v40 }
  0x70   : > { %323 = vst [vmem:[#allocation2] sm:$0x1] %v322_v41  ;;  %677 = vlog2.f32 %v294_v42 }
  0x71   : > { %679 = vlog2.f32 %v295_v43 }
  0x7a   : > { %v678_v47 = vpop.eup %677 }
  0x7b   : > { %v680_v49 = vpop.eup %679  ;;  %v297_v50 = vmul.f32 0.6931472, %v678_v47 }
  0x7c   : > { %v299_v51 = vmul.f32 0.6931472, %v680_v49 }
  0x7d   : > { %v300_v52 = vadd.f32 %v297_v50, %v284_v46 }
  0x7e   : > { %v301_v53 = vadd.f32 %v299_v51, %v285_v48 }
  0x7f   : > { %v302_v54 = vsub.f32 0.0, %v300_v52 }
  0x80   : > { %v303_v55 = vsub.f32 0.0, %v301_v53 }
  0x81   : > { %v304_v56 = vmul.f32 1.442695, %v302_v54 }
  0x82   : > { %v306_v57 = vmul.f32 1.442695, %v303_v55 }
  0x83   : > { %681 = vpow2.f32 %v304_v56 }
  0x84   : > { %683 = vpow2.f32 %v306_v57 }
  0x8d   : > { %v682_v58 = vpop.eup %681 }
  0x8e   : > { %v684_v59 = vpop.eup %683  ;;  %v308_v60 = vsub.f32 1.0, %v682_v58 }
  0x8f   : > { %v309_v61 = vsub.f32 1.0, %v684_v59 }
  0x90   : > { %v310_v62 = vmul.f32 %v308_v60, %v308_v60 }
  0x91   : > { %v311_v63 = vmul.f32 %v309_v61, %v309_v61 }
  0x92   : > { %v312_v0 = vmul.f32 %v310_v62, %v300_v52 }
  0x93   : > { %v313_v1 = vmul.f32 %v311_v63, %v301_v53 }
  0x95   : > { %v314_v2 = vadd.f32 %v313_v1, %v312_v0 }
  0x97   : > { %v315_v3 = vrot.slane %v314_v2, 4 }
  0x99   : > { %v316_v4 = vadd.f32 %v315_v3, %v314_v2 }
  0x9b   : > { %v317_v5 = vrot.slane %v316_v4, 2 }
  0x9d   : > { %v318_v6 = vadd.f32 %v317_v5, %v316_v4 }
  0x9f   : > { %v319_v7 = vrot.slane %v318_v6, 1 }
  0xa1   : > { %v320_v9 = vadd.f32 %v319_v7, %v318_v6 }
  0xa3   : > { %v331_v10 = vadd.f32 %v330_v8, %v320_v9 }
  0xa5   : > { %332 = vst [vmem:[#allocation2 + $0x3] sm:$0x1] %v331_v10 }
  0xa6 PF: > { %p572_p8 = scmp.le.s32.totalorder %s1054_s5, %s1046_s4 }
  0xa7   : > { %v337_v11 = vlaneseq (!%p572_p8)  ;;  %v344_v13 = vstv (!%p572_p8), %s570_s24  ;;  %v349_v19 = vstv (!%p572_p8), %s1046_s4  ;;  %v352_v22 = vld [vmem:[%s1032_s12] sm:$0xff] (!%p572_p8)  ;;  %v353_v26 = vld [vmem:[%s1032_s12 + $0x8] sm:$0xff] (!%p572_p8) }
  0xa8   : > { %336 = sbr.rel (%p572_p8) target bundleno = 254 (0xfe), region = 48  ;;  %v356_v23 = vld [vmem:[%s1038_s13] sm:$0xff] (!%p572_p8)  ;;  %v357_v27 = vld [vmem:[%s1038_s13 + $0x8] sm:$0xff] (!%p572_p8) }
  0xa9   : > { %v338_v12 = vshrl.u32 (!%p572_p8), %v337_v11, 7  ;;  %v341_v15 = vand.u32 (!%p572_p8), 127, %v337_v11  ;;  %v427_v59 = vld [vmem:[#allocation2 + $0x1] sm:$0x1] (!%p572_p8)  ;;  %v430_v60 = vld [vmem:[#allocation2 + $0x2] sm:$0x1] (!%p572_p8) }
  0xaa   : > { %v424_v61 = vld [vmem:[#allocation2] sm:$0x1] (!%p572_p8) }
  0xab   : > { %v339_v14 = vadd.s32 (!%p572_p8), 8, %v338_v12  ;;  %v342_v16 = vmul.u32 (!%p572_p8), 128, %v338_v12 }
  0xad   : > { %v343_v17 = vmul.u32 (!%p572_p8), 128, %v339_v14  ;;  %v345_v18 = vadd.s32 (!%p572_p8), %v344_v13, %v342_v16 }
  0xaf   : > { %v346_v20 = vadd.s32 %v344_v13, %v343_v17  ;;  %v347_v21 = vadd.s32 %v345_v18, %v341_v15 }
  0xb1   : > { %v348_v24 = vadd.s32 %v346_v20, %v341_v15  ;;  %vm1070_vm0 = vcmp.lt.s32.totalorder %v347_v21, %v349_v19 }
  0xb2   : > { %v354_v28 = vsel %vm1070_vm0, %v352_v22, 0.0  ;;  %v358_v29 = vsel %vm1070_vm0, %v356_v23, 0.0 }
  0xb3   : > { %vm1080_vm1 = vcmp.lt.s32.totalorder %v348_v24, %v349_v19  ;;  %v387_v31 = vand.u32 2147483647, %v354_v28  ;;  %v360_v34 = vmul.f32 %v358_v29, %v354_v28  ;;  %v383_v8 = vmax.f32 %v354_v28, 0.0 }
  0xb4   : > { %v355_v32 = vsel %vm1080_vm1, %v353_v26, 0.0  ;;  %v359_v33 = vsel %vm1080_vm1, %v357_v27, 0.0 }
  0xb5   : > { %v361_v35 = vmul.f32 %v359_v33, %v355_v32  ;;  %v388_v36 = vand.u32 2147483647, %v355_v32  ;;  %v389_v37 = vsub.f32 0.0, %v387_v31  ;;  %v369_v38 = vadd.f32 %v355_v32, %v354_v28 }
  0xb6   : > { %v376_v39 = vadd.f32 %v359_v33, %v358_v29  ;;  %v384_v9 = vmax.f32 %v355_v32, 0.0  ;;  %v385_v10 = vsub.f32 %v383_v8, %v360_v34 }
  0xb7   : > { %v362_v40 = vadd.f32 %v361_v35, %v360_v34  ;;  %v390_v41 = vsub.f32 0.0, %v388_v36  ;;  %v391_v42 = vmul.f32 1.442695, %v389_v37  ;;  %v370_v43 = vrot.slane %v369_v38, 4 }
  0xb8   : > { %v377_v44 = vrot.slane %v376_v39, 4  ;;  %v386_v12 = vsub.f32 %v384_v9, %v361_v35 }
  0xb9   : > { %v363_v45 = vrot.slane %v362_v40, 4  ;;  %v393_v46 = vmul.f32 1.442695, %v390_v41  ;;  %685 = vpow2.f32 %v391_v42  ;;  %v371_v47 = vadd.f32 %v370_v43, %v369_v38 }
  0xba   : > { %v378_v48 = vadd.f32 %v377_v44, %v376_v39 }
  0xbb   : > { %v364_v49 = vadd.f32 %v363_v45, %v362_v40  ;;  %687 = vpow2.f32 %v393_v46  ;;  %v372_v50 = vrot.slane %v371_v47, 2  ;;  %v433_v40 = vld [vmem:[#allocation2 + $0x3] sm:$0x1] }
  0xbc   : > { %v379_v51 = vrot.slane %v378_v48, 2 }
  0xbd   : > { %v365_v52 = vrot.slane %v364_v49, 2  ;;  %v373_v53 = vadd.f32 %v372_v50, %v371_v47 }
  0xbe   : > { %v380_v54 = vadd.f32 %v379_v51, %v378_v48 }
  0xbf   : > { %v366_v55 = vadd.f32 %v365_v52, %v364_v49  ;;  %v374_v56 = vrot.slane %v373_v53, 1 }
  0xc0   : > { %v381_v57 = vrot.slane %v380_v54, 1 }
  0xc1   : > { %v367_v58 = vrot.slane %v366_v55, 1  ;;  %v375_v62 = vadd.f32 %v374_v56, %v373_v53 }
  0xc2   : > { %v382_v63 = vadd.f32 %v381_v57, %v380_v54 }
  0xc3   : > { %v368_v0 = vadd.f32 %v367_v58, %v366_v55  ;;  %v686_v1 = vpop.eup %685  ;;  %v428_v2 = vadd.f32 %v427_v59, %v375_v62 }
  0xc4   : > { %v431_v3 = vadd.f32 %v430_v60, %v382_v63  ;;  %v395_v6 = vadd.f32 1.0, %v686_v1 }
  0xc5   : > { %v688_v4 = vpop.eup %687  ;;  %v425_v5 = vadd.f32 %v424_v61, %v368_v0  ;;  %429 = vst [vmem:[#allocation2 + $0x1] sm:$0x1] %v428_v2 }
  0xc6   : > { %432 = vst [vmem:[#allocation2 + $0x2] sm:$0x1] %v431_v3  ;;  %v396_v7 = vadd.f32 1.0, %v688_v4  ;;  %689 = vlog2.f32 %v395_v6 }
  0xc7   : > { %426 = vst [vmem:[#allocation2] sm:$0x1] %v425_v5 }
  0xc8   : > { %691 = vlog2.f32 %v396_v7 }
  0xd0   : > { %v690_v11 = vpop.eup %689 }
  0xd1   : > { %v398_v14 = vmul.f32 0.6931472, %v690_v11 }
  0xd2   : > { %v692_v13 = vpop.eup %691 }
  0xd3   : > { %v400_v15 = vmul.f32 0.6931472, %v692_v13  ;;  %v401_v16 = vadd.f32 %v398_v14, %v385_v10 }
  0xd5   : > { %v402_v17 = vadd.f32 %v400_v15, %v386_v12  ;;  %v403_v18 = vsub.f32 0.0, %v401_v16 }
  0xd7   : > { %v404_v19 = vsub.f32 0.0, %v402_v17  ;;  %v405_v20 = vmul.f32 1.442695, %v403_v18 }
  0xd9   : > { %v407_v21 = vmul.f32 1.442695, %v404_v19  ;;  %693 = vpow2.f32 %v405_v20 }
  0xdb   : > { %695 = vpow2.f32 %v407_v21 }
  0xe3   : > { %v694_v22 = vpop.eup %693 }
  0xe4   : > { %v409_v24 = vsub.f32 1.0, %v694_v22 }
  0xe5   : > { %v696_v23 = vpop.eup %695 }
  0xe6   : > { %v410_v26 = vsub.f32 1.0, %v696_v23  ;;  %v411_v27 = vmul.f32 %v409_v24, %v409_v24 }
  0xe8   : > { %v412_v28 = vmul.f32 %v410_v26, %v410_v26  ;;  %v413_v29 = vmul.f32 %v411_v27, %v401_v16 }
  0xea   : > { %v414_v31 = vmul.f32 %v412_v28, %v402_v17  ;;  %v415_v32 = vsel %vm1070_vm0, %v413_v29, 0.0 }
  0xec   : > { %v416_v33 = vsel %vm1080_vm1, %v414_v31, 0.0 }
  0xed   : > { %v417_v34 = vadd.f32 %v416_v33, %v415_v32 }
  0xef   : > { %v418_v35 = vrot.slane %v417_v34, 4 }
  0xf1   : > { %v419_v36 = vadd.f32 %v418_v35, %v417_v34 }
  0xf3   : > { %v420_v37 = vrot.slane %v419_v36, 2 }
  0xf5   : > { %v421_v38 = vadd.f32 %v420_v37, %v419_v36 }
  0xf7   : > { %v422_v39 = vrot.slane %v421_v38, 1 }
  0xf9   : > { %v423_v41 = vadd.f32 %v422_v39, %v421_v38 }
  0xfb   : > { %v434_v42 = vadd.f32 %v433_v40, %v423_v41 }
  0xfd   : > { %435 = vst [vmem:[#allocation2 + $0x3] sm:$0x1] %v434_v42 }
  0xfe PF: > { %s574_s25 = sshll.u32 %s856_s19, 6  ;;  %s455_s7 = sshll.u32 %s233_s17, 4  ;;  %s456_s7 = int_to_ptr.vmem [resolvable:$true] %s455_s7 }
  0xff   : > { %s1098_s27 = scalar_lea.hbm %s1152_s3, %s574_s25  ;;  %s442_s9 = scalar_lea.sflag [#allocation7], %s231_s22 }
 0x100   : > { %s757_s10 = scalar_lea.vmem %s456_s7, 64  ;;  %p1167_p10 = scmp.ne.s32.totalorder %s1157_s29, 0 }
 0x101   : > { %p758_p9 = scmp.ne.s32.totalorder %s456_s7, %s757_s10  ;;  %s871_s11 = smov [#allocation10]  }
 0x102   : > { %s761_s12 = sshll.u32 %s871_s11, 4  ;;  %s762_s12 = int_to_ptr.vmem [resolvable:$false] %s761_s12 }
 0x103   : > { %p759_p11 = pnand %p758_p9, %p1167_p10  ;;  %s763_s19 = scalar_lea.vmem %s762_s12, 128 }
 0x104   : > { %v439_v43 = vld [vmem:[#allocation2] sm:$0xf]  ;;  %p764_p3 = scmp.lt.s32.totalorder %s456_s7, %s762_s12  ;;  %p765_p7 = scmp.lt.s32.totalorder %s763_s19, %s757_s10 }
 0x105   : > { %440 = vst [vmem:[%s233_s17] sm:$0xf] %v439_v43  ;;  %p760_p1 = pneg %p759_p11 }
 0x106   : > { %p766_p13 = por %p765_p7, %p764_p3 }
 0x108   : > { %p767_p4 = pnand %p766_p13, %p760_p1 }
 0x10a   : > { %770 = shalt.err (!%p767_p4)
}
 0x10b   : > { %s771_s6 = scalar_lea.hbm %s1098_s27, 64  ;;  %s775_s24 = scalar_lea.hbm %s1152_s3, 128 }
 0x10c   : > { %p772_p6 = scmp.ne.s32.totalorder %s1098_s27, %s771_s6  ;;  %p776_p5 = scmp.lt.u32.totalorder %s1098_s27, %s1152_s3 }
 0x10d   : > { %p777_p2 = scmp.lt.u32.totalorder %s775_s24, %s771_s6  ;;  %p779_p9 = scmp.lt.u32.totalorder %s771_s6, %s1098_s27 }
 0x10e   : > { %p773_p12 = pnand %p772_p6, %p1167_p10 }
 0x10f   : > { %p778_p8 = por %p777_p2, %p776_p5 }
 0x110   : > { %p774_p0 = pneg %p773_p12 }
 0x111   : > { %p780_p11 = por %p779_p9, %p778_p8 }
 0x113   : > { %p781_p1 = pnand %p780_p11, %p774_p0 }
 0x115   : > { %784 = shalt.err (!%p781_p1)
}
 0x116   : > { %583 = dma.vmem_to_hbm [thread:$0]  (%p1167_p10), %s456_s7, 64, %s1098_s27, %s442_s9  }
 0x117 PF: > { %s467_s5 = sand.u32 1, %s836_s14   ;;  %p1168_p3 = scmp.ne.s32.totalorder %s1158_s30, 0 }
 0x118   : > { %p1169_p7 = scmp.ge.s32.totalorder %s864_s0, 2  ;;  %s468_s17 = scalar_lea.sflag [#allocation7], %s467_s5 }
 0x11a   : > { %p593_p13 = pnand %p1169_p7, %p1168_p3 }
 0x11c   : > { %830 = dma.done.wait (!%p593_p13), %s468_s17, 64  }
 0x11d   : > { %832 = vsyncadd (!%p593_p13), %s468_s17, 4294967232  ;;  %s23_s0 = sadd.s32 1, %s864_s0   ;;  %s1170_s14 = smov %s840_s15 }
 0x11e   : > { %p20_p4 = scmp.ge.s32.totalorder %s23_s0, 4   ;;  %s1171_s15 = smov %s844_s16 }
 0x11f   : > { %s1172_s16 = smov %s953_s28  ;;  %s1173_s17 = smov %s852_s18 }
 0x120   : > { %s1139_s18 = smov 0   ;;  %s1174_s19 = smov %s860_s20 }
 0x121   : > { %s1175_s20 = smov %s1177_s23  ;;  %22 = sbr.rel (!%p20_p4) target bundleno = 11 (0xb), region = 102 }
 0x128   :  { %473 = vsyncpa [#allocation6], 1 }
 0x129   :  { %475 = vsyncpa [#allocation6 + $0x1], 1 }
 0x12a   :  { %476 = vsyncpa [#allocation9], 1 }
 0x12b   :  { %478 = vsyncpa [#allocation9 + $0x1], 1 }
 0x12c   :  { %479 = vsyncpa [#allocation7], 1 }
 0x12d   :  { %481 = vsyncpa [#allocation7 + $0x1], 1 }

</bundles_post_ra>
